<compile_context>
chip_gen: v7x
topology: tpu7x:2x2x1
jax: 0.10.0
libtpu: 0.0.40
codegen_flags: <defaults>
</compile_context>

<pallas_src>
import jax
import jax.numpy as jnp
from jax.experimental import pallas as pl
from jax.experimental.pallas import tpu as pltpu

LANE = 128       # minimum lane-dense feature width
SUBLANE = 8      # f32 sublane width
NEG_INF = -1e30  # softmax mask value baked into the padded final-bias columns


def _round_up(x, m):
    return ((x + m - 1) // m) * m


def _device_kind():
    try:
        return jax.devices()[0].device_kind.lower()
    except Exception:
        return ""


def _feature_multiple():
    """256-multiple padding for big feature dims on 256-wide-MXU chips."""
    kind = _device_kind()
    return 256 if any(t in kind for t in ("v6", "v7", "7x")) else 128


def _is_multi_core_chip():
    """v7x has 2 TensorCores per chip; give the batch grid >=2 steps there."""
    kind = _device_kind()
    return any(t in kind for t in ("v7", "7x"))


def _pad_feature(d, mult):
    if d <= LANE:
        return LANE
    return _round_up(d, mult)


# --------------------------------------------------------------------------
# Kernel
# --------------------------------------------------------------------------
def _make_fused_mlp_kernel(n_layers):
    """softmax(relu(...relu(x@w0+b0)...)@wL + bL, axis=-1) in one kernel.

    Args: (x_ref, w0, b0, ..., w_{L-1}, b_{L-1}, o_ref).  Static layer loop is
    unrolled in Python; the activation stays in VMEM/vregs the whole time.
    Weights arrive pre-padded + pre-cast to bf16; the final bias's padded
    columns hold -1e30 so no explicit label mask is needed.
    """

    def kernel(x_ref, *rest):
        o_ref = rest[-1]
        wb = rest[:-1]
        h = x_ref[...]  # (TM, K) f32
        for li in range(n_layers):
            w_ref = wb[2 * li]       # bf16 [K, N]
            b_ref = wb[2 * li + 1]   # f32  [1, N]
            acc = jnp.dot(
                h.astype(jnp.bfloat16),
                w_ref[...],
                preferred_element_type=jnp.float32,
            )
            acc = acc + b_ref[...]
            if li < n_layers - 1:
                h = jnp.maximum(acc, 0.0)
            else:
                # Stable softmax; padded label cols already at -1e30 via bias.
                m = jnp.max(acc, axis=-1, keepdims=True)
                e = jnp.exp(acc - m)
                denom = jnp.sum(e, axis=-1, keepdims=True)
                inv = pl.reciprocal(denom, approx=False)  # exact: tight row sums
                o_ref[...] = (e * inv).astype(o_ref.dtype)

    return kernel


# --------------------------------------------------------------------------
# Parameter init / one-time prep
# --------------------------------------------------------------------------
def init_mlp_params(key, input_shape, n_hidden_layers, hidden_dim, n_labels):
    """PyTorch nn.Linear default init: U(-1/sqrt(fan_in), 1/sqrt(fan_in))."""
    dims = [input_shape] + [hidden_dim] * (n_hidden_layers + 1) + [n_labels]
    params = []
    for din, dout in zip(dims[:-1], dims[1:]):
        kw, kb, key = jax.random.split(key, 3)
        bound = 1.0 / jnp.sqrt(jnp.float32(din))
        w = jax.random.uniform(kw, (din, dout), jnp.float32, -bound, bound)
        b = jax.random.uniform(kb, (1, dout), jnp.float32, -bound, bound)
        params.append((w, b))
    return params


def prepare_mlp_params(params, n_labels):
    """ONE-TIME prep (do NOT repeat per forward call):
    pad feature dims, cast weights to bf16, bake softmax mask into final bias."""
    mult = _feature_multiple()
    n_layers = len(params)
    din = params[0][0].shape[0]
    # First-layer K dim: skip padding when small (block dim == array dim is
    # exempt from the (8,128) rule); pad to a lane multiple otherwise.
    din_k = din if din <= LANE else _round_up(din, mult)

    layers = []
    in_dim = din_k
    for li, (w, b) in enumerate(params):
        wi, wo = w.shape
        wo_pad = _pad_feature(wo, mult)
        w_p = jnp.pad(
            w.astype(jnp.float32), ((0, in_dim - wi), (0, wo_pad - wo))
        ).astype(jnp.bfloat16)
        if li == n_layers - 1:
            # Padded weight cols contribute 0 to the matmul, so a -1e30 bias
            # makes padded logits -1e30 -> exp() == 0 under the softmax.
            b_p = jnp.pad(
                b.astype(jnp.float32), ((0, 0), (0, wo_pad - wo)),
                constant_values=NEG_INF,
            )
        else:
            b_p = jnp.pad(b.astype(jnp.float32), ((0, 0), (0, wo_pad - wo)))
        layers.append((w_p, b_p))
        in_dim = wo_pad

    return {
        "layers": layers,
        "n_labels": n_labels,
        "din": din,
        "din_pad": din_k,
        "l_pad": layers[-1][0].shape[1],
    }


# --------------------------------------------------------------------------
# Forward
# --------------------------------------------------------------------------
def _vmem_limit_bytes(tm, din_pad, layers, l_pad):
    wb = sum(
        w.size * w.dtype.itemsize + b.size * b.dtype.itemsize for w, b in layers
    )
    max_feat = max([din_pad] + [w.shape[1] for w, _ in layers])
    io_tiles = 2 * tm * din_pad * 4 + 2 * tm * l_pad * 4  # double-buffered x / out
    act = 4 * tm * max_feat * 4                           # activation / acc headroom
    need = int(wb + io_tiles + act + (4 << 20))
    # floor at a comfortable default, cap at 64 MiB (fits every generation).
    return int(min(max(need, 16 << 20), 64 << 20))


def _build_pallas_fn(layers, tm, b_pad, din_pad, l_pad, single_buffer_weights,
                     vmem_limit):
    wb_kwargs = (
        dict(pipeline_mode=pl.Buffered(1)) if single_buffer_weights else {}
    )
    in_specs = [pl.BlockSpec((tm, din_pad), lambda i: (i, 0))]
    for (w_p, b_p) in layers:
        in_specs.append(pl.BlockSpec(w_p.shape, lambda i: (0, 0), **wb_kwargs))
        in_specs.append(pl.BlockSpec(b_p.shape, lambda i: (0, 0), **wb_kwargs))
    out_specs = pl.BlockSpec((tm, l_pad), lambda i: (i, 0))

    return pl.pallas_call(
        _make_fused_mlp_kernel(len(layers)),
        out_shape=jax.ShapeDtypeStruct((b_pad, l_pad), jnp.float32),
        grid=(b_pad // tm,),
        in_specs=in_specs,
        out_specs=out_specs,
        compiler_params=pltpu.CompilerParams(
            dimension_semantics=("parallel",),   # split batch over TCs (v7x)
            vmem_limit_bytes=vmem_limit,
        ),
    )


def mlp_forward(x, prepped):
    """Fused forward pass: one pallas_call for the whole MLP."""
    B, din = x.shape
    layers = prepped["layers"]
    din_pad = prepped["din_pad"]
    l_pad = prepped["l_pad"]
    n_labels = prepped["n_labels"]
    assert din == prepped["din"]

    # Batch tile: large tiles amortize the per-grid-step overhead; on multi-TC
    # chips make sure there are >=2 grid steps so "parallel" engages both cores.
    tm = min(512, _round_up(B, SUBLANE))
    if _is_multi_core_chip() and B >= 2 * SUBLANE:
        tm = min(tm, _round_up(-(-B // 2), SUBLANE))
    b_pad = _round_up(B, tm)

    x_pad = x
    if b_pad != B or din_pad != din:
        x_pad = jnp.pad(x, ((0, b_pad - B), (0, din_pad - din)))

    flat_args = [x_pad]
    for (w_p, b_p) in layers:
        flat_args.append(w_p)
        flat_args.append(b_p)

    vmem_limit = _vmem_limit_bytes(tm, din_pad, layers, l_pad)

    try:
        fn = _build_pallas_fn(layers, tm, b_pad, din_pad, l_pad,
                              single_buffer_weights=True, vmem_limit=vmem_limit)
        out_pad = fn(*flat_args)
    except Exception:
        # Fallback: identical kernel without single-buffered weight specs.
        fn = _build_pallas_fn(layers, tm, b_pad, din_pad, l_pad,
                              single_buffer_weights=False, vmem_limit=vmem_limit)
        out_pad = fn(*flat_args)

    return out_pad[:B, :n_labels]


def _mlp_reference(x, params):
    """Pure-JAX f32 reference."""
    h = x
    for (w, b) in params[:-1]:
        h = jnp.maximum(h @ w + b, 0.0)
    w, b = params[-1]
    return jax.nn.softmax(h @ w + b, axis=1)


if __name__ == "__main__":
    key = jax.random.PRNGKey(0)
    kx, kp = jax.random.split(key)

    batch = 8
    input_shape = 32
    n_hidden_layers = 2
    hidden_dim = 32
    n_labels = 8

    x = jax.random.normal(kx, (batch, input_shape), jnp.float32)
    params = init_mlp_params(kp, input_shape, n_hidden_layers, hidden_dim,
                             n_labels)

    # One-time prep (pad + bf16 cast + mask-in-bias), reused across calls.
    prepped = prepare_mlp_params(params, n_labels)

    out = jax.block_until_ready(mlp_forward(x, prepped))
    assert out.shape == (batch, n_labels)

    # softmax rows sum to 1 (exact reciprocal in kernel)
    row_sums = jnp.sum(out, axis=1)
    assert jnp.allclose(row_sums, jnp.ones_like(row_sums), atol=1e-4)

    # matches pure-JAX f32 reference (loose tol: bf16 matmul operands)
    ref = _mlp_reference(x, params)
    assert jnp.allclose(out, ref, atol=5e-2), float(jnp.max(jnp.abs(out - ref)))

    print("KERNEL_OK")
</pallas_src>

<mosaic_0001>
module attributes {stable_mosaic.version = 11 : i64} {
  func.func @kernel(%arg0: i32, %arg1: memref<8x32xf32, #tpu.memory_space<vmem>>, %arg2: memref<32x128xbf16, #tpu.memory_space<vmem>>, %arg3: memref<1x128xf32, #tpu.memory_space<vmem>>, %arg4: memref<128x128xbf16, #tpu.memory_space<vmem>>, %arg5: memref<1x128xf32, #tpu.memory_space<vmem>>, %arg6: memref<128x128xbf16, #tpu.memory_space<vmem>>, %arg7: memref<1x128xf32, #tpu.memory_space<vmem>>, %arg8: memref<128x128xbf16, #tpu.memory_space<vmem>>, %arg9: memref<1x128xf32, #tpu.memory_space<vmem>>, %arg10: memref<8x128xf32, #tpu.memory_space<vmem>>) attributes {dimension_semantics = [#tpu.dimension_semantics<parallel>], iteration_bounds = array<i64: 1>, scalar_prefetch = 0 : i64, scratch_operands = 0 : i64, tpu.core_type = #tpu.core_type<tc>, window_params = [{transform_indices = @transform_0, window_bounds = array<i64: 8, 32>}, {pipeline_mode = #tpu.pipeline_mode<synchronous>, transform_indices = @transform_1, window_bounds = array<i64: 32, 128>}, {pipeline_mode = #tpu.pipeline_mode<synchronous>, transform_indices = @transform_2, window_bounds = array<i64: 1, 128>}, {pipeline_mode = #tpu.pipeline_mode<synchronous>, transform_indices = @transform_3, window_bounds = array<i64: 128, 128>}, {pipeline_mode = #tpu.pipeline_mode<synchronous>, transform_indices = @transform_4, window_bounds = array<i64: 1, 128>}, {pipeline_mode = #tpu.pipeline_mode<synchronous>, transform_indices = @transform_5, window_bounds = array<i64: 128, 128>}, {pipeline_mode = #tpu.pipeline_mode<synchronous>, transform_indices = @transform_6, window_bounds = array<i64: 1, 128>}, {pipeline_mode = #tpu.pipeline_mode<synchronous>, transform_indices = @transform_7, window_bounds = array<i64: 128, 128>}, {pipeline_mode = #tpu.pipeline_mode<synchronous>, transform_indices = @transform_8, window_bounds = array<i64: 1, 128>}, {transform_indices = @transform_9, window_bounds = array<i64: 8, 128>}]} {
    %c0 = arith.constant 0 : index
    %c0_0 = arith.constant 0 : index
    %0 = vector.load %arg1[%c0, %c0_0] : memref<8x32xf32, #tpu.memory_space<vmem>>, vector<8x32xf32>
    %1 = arith.truncf %0 : vector<8x32xf32> to vector<8x32xbf16>
    %c0_1 = arith.constant 0 : index
    %c0_2 = arith.constant 0 : index
    %2 = vector.load %arg2[%c0_1, %c0_2] : memref<32x128xbf16, #tpu.memory_space<vmem>>, vector<32x128xbf16>
    %cst = arith.constant dense<0.000000e+00> : vector<8x128xf32>
    %3 = tpu.matmul %1, %2, %cst {dimension_numbers = #tpu.dot_dimension_numbers<[1], [0], [0], [1], [0, 0, 1, 1], [], []>} : vector<8x32xbf16>, vector<32x128xbf16>, vector<8x128xf32> -> vector<8x128xf32>
    %c0_3 = arith.constant 0 : index
    %c0_4 = arith.constant 0 : index
    %4 = vector.load %arg3[%c0_3, %c0_4] : memref<1x128xf32, #tpu.memory_space<vmem>>, vector<1x128xf32>
    %5 = vector.broadcast %4 : vector<1x128xf32> to vector<8x128xf32>
    %6 = arith.addf %3, %5 : vector<8x128xf32>
    %cst_5 = arith.constant 0.000000e+00 : f32
    %7 = vector.broadcast %cst_5 : f32 to vector<8x128xf32>
    %8 = arith.maximumf %6, %7 : vector<8x128xf32>
    %9 = arith.truncf %8 : vector<8x128xf32> to vector<8x128xbf16>
    %c0_6 = arith.constant 0 : index
    %c0_7 = arith.constant 0 : index
    %10 = vector.load %arg4[%c0_6, %c0_7] : memref<128x128xbf16, #tpu.memory_space<vmem>>, vector<128x128xbf16>
    %cst_8 = arith.constant dense<0.000000e+00> : vector<8x128xf32>
    %11 = tpu.matmul %9, %10, %cst_8 {dimension_numbers = #tpu.dot_dimension_numbers<[1], [0], [0], [1], [0, 0, 1, 1], [], []>} : vector<8x128xbf16>, vector<128x128xbf16>, vector<8x128xf32> -> vector<8x128xf32>
    %c0_9 = arith.constant 0 : index
    %c0_10 = arith.constant 0 : index
    %12 = vector.load %arg5[%c0_9, %c0_10] : memref<1x128xf32, #tpu.memory_space<vmem>>, vector<1x128xf32>
    %13 = vector.broadcast %12 : vector<1x128xf32> to vector<8x128xf32>
    %14 = arith.addf %11, %13 : vector<8x128xf32>
    %cst_11 = arith.constant 0.000000e+00 : f32
    %15 = vector.broadcast %cst_11 : f32 to vector<8x128xf32>
    %16 = arith.maximumf %14, %15 : vector<8x128xf32>
    %17 = arith.truncf %16 : vector<8x128xf32> to vector<8x128xbf16>
    %c0_12 = arith.constant 0 : index
    %c0_13 = arith.constant 0 : index
    %18 = vector.load %arg6[%c0_12, %c0_13] : memref<128x128xbf16, #tpu.memory_space<vmem>>, vector<128x128xbf16>
    %cst_14 = arith.constant dense<0.000000e+00> : vector<8x128xf32>
    %19 = tpu.matmul %17, %18, %cst_14 {dimension_numbers = #tpu.dot_dimension_numbers<[1], [0], [0], [1], [0, 0, 1, 1], [], []>} : vector<8x128xbf16>, vector<128x128xbf16>, vector<8x128xf32> -> vector<8x128xf32>
    %c0_15 = arith.constant 0 : index
    %c0_16 = arith.constant 0 : index
    %20 = vector.load %arg7[%c0_15, %c0_16] : memref<1x128xf32, #tpu.memory_space<vmem>>, vector<1x128xf32>
    %21 = vector.broadcast %20 : vector<1x128xf32> to vector<8x128xf32>
    %22 = arith.addf %19, %21 : vector<8x128xf32>
    %cst_17 = arith.constant 0.000000e+00 : f32
    %23 = vector.broadcast %cst_17 : f32 to vector<8x128xf32>
    %24 = arith.maximumf %22, %23 : vector<8x128xf32>
    %25 = arith.truncf %24 : vector<8x128xf32> to vector<8x128xbf16>
    %c0_18 = arith.constant 0 : index
    %c0_19 = arith.constant 0 : index
    %26 = vector.load %arg8[%c0_18, %c0_19] : memref<128x128xbf16, #tpu.memory_space<vmem>>, vector<128x128xbf16>
    %cst_20 = arith.constant dense<0.000000e+00> : vector<8x128xf32>
    %27 = tpu.matmul %25, %26, %cst_20 {dimension_numbers = #tpu.dot_dimension_numbers<[1], [0], [0], [1], [0, 0, 1, 1], [], []>} : vector<8x128xbf16>, vector<128x128xbf16>, vector<8x128xf32> -> vector<8x128xf32>
    %c0_21 = arith.constant 0 : index
    %c0_22 = arith.constant 0 : index
    %28 = vector.load %arg9[%c0_21, %c0_22] : memref<1x128xf32, #tpu.memory_space<vmem>>, vector<1x128xf32>
    %29 = vector.broadcast %28 : vector<1x128xf32> to vector<8x128xf32>
    %30 = arith.addf %27, %29 : vector<8x128xf32>
    %cst_23 = arith.constant dense<0xFF800000> : vector<8xf32>
    %31 = vector.multi_reduction <maximumf>, %30, %cst_23 [1] : vector<8x128xf32> to vector<8xf32>
    %32 = vector.shape_cast %31 : vector<8xf32> to vector<8x1xf32>
    %33 = vector.broadcast %32 : vector<8x1xf32> to vector<8x128xf32>
    %34 = arith.subf %30, %33 : vector<8x128xf32>
    %35 = math.exp %34 : vector<8x128xf32>
    %cst_24 = arith.constant dense<0.000000e+00> : vector<8xf32>
    %36 = vector.multi_reduction <add>, %35, %cst_24 [1] : vector<8x128xf32> to vector<8xf32>
    %37 = vector.shape_cast %36 : vector<8xf32> to vector<8x1xf32>
    %38 = tpu.reciprocal %37 : vector<8x1xf32> -> vector<8x1xf32>
    %39 = vector.broadcast %38 : vector<8x1xf32> to vector<8x128xf32>
    %40 = arith.mulf %35, %39 : vector<8x128xf32>
    %c0_25 = arith.constant 0 : index
    %c0_26 = arith.constant 0 : index
    %41 = vector.load %arg10[%c0_25, %c0_26] : memref<8x128xf32, #tpu.memory_space<vmem>>, vector<8x128xf32>
    tpu.vector_store %arg10[%c0_25, %c0_26], %40 {strides = array<i32>} : memref<8x128xf32, #tpu.memory_space<vmem>>, vector<8x128xf32>,
    return
  }
  func.func @transform_0(%arg0: i32) -> (i32, i32) {
    %c0_i32 = arith.constant 0 : i32
    %c0_i32_0 = arith.constant 0 : i32
    return %arg0, %c0_i32 : i32, i32
  }
  func.func @transform_1(%arg0: i32) -> (i32, i32) {
    %c0_i32 = arith.constant 0 : i32
    %c0_i32_0 = arith.constant 0 : i32
    %c0_i32_1 = arith.constant 0 : i32
    return %c0_i32, %c0_i32_0 : i32, i32
  }
  func.func @transform_2(%arg0: i32) -> (i32, i32) {
    %c0_i32 = arith.constant 0 : i32
    %c0_i32_0 = arith.constant 0 : i32
    %c0_i32_1 = arith.constant 0 : i32
    return %c0_i32, %c0_i32_0 : i32, i32
  }
  func.func @transform_3(%arg0: i32) -> (i32, i32) {
    %c0_i32 = arith.constant 0 : i32
    %c0_i32_0 = arith.constant 0 : i32
    %c0_i32_1 = arith.constant 0 : i32
    return %c0_i32, %c0_i32_0 : i32, i32
  }
  func.func @transform_4(%arg0: i32) -> (i32, i32) {
    %c0_i32 = arith.constant 0 : i32
    %c0_i32_0 = arith.constant 0 : i32
    %c0_i32_1 = arith.constant 0 : i32
    return %c0_i32, %c0_i32_0 : i32, i32
  }
  func.func @transform_5(%arg0: i32) -> (i32, i32) {
    %c0_i32 = arith.constant 0 : i32
    %c0_i32_0 = arith.constant 0 : i32
    %c0_i32_1 = arith.constant 0 : i32
    return %c0_i32, %c0_i32_0 : i32, i32
  }
  func.func @transform_6(%arg0: i32) -> (i32, i32) {
    %c0_i32 = arith.constant 0 : i32
    %c0_i32_0 = arith.constant 0 : i32
    %c0_i32_1 = arith.constant 0 : i32
    return %c0_i32, %c0_i32_0 : i32, i32
  }
  func.func @transform_7(%arg0: i32) -> (i32, i32) {
    %c0_i32 = arith.constant 0 : i32
    %c0_i32_0 = arith.constant 0 : i32
    %c0_i32_1 = arith.constant 0 : i32
    return %c0_i32, %c0_i32_0 : i32, i32
  }
  func.func @transform_8(%arg0: i32) -> (i32, i32) {
    %c0_i32 = arith.constant 0 : i32
    %c0_i32_0 = arith.constant 0 : i32
    %c0_i32_1 = arith.constant 0 : i32
    return %c0_i32, %c0_i32_0 : i32, i32
  }
  func.func @transform_9(%arg0: i32) -> (i32, i32) {
    %c0_i32 = arith.constant 0 : i32
    %c0_i32_0 = arith.constant 0 : i32
    return %arg0, %c0_i32 : i32, i32
  }
}

module attributes {stable_mosaic.version = 11 : i64} {
  func.func @kernel(%arg0: i32, %arg1: memref<8x32xf32, #tpu.memory_space<vmem>>, %arg2: memref<32x128xbf16, #tpu.memory_space<vmem>>, %arg3: memref<1x128xf32, #tpu.memory_space<vmem>>, %arg4: memref<128x128xbf16, #tpu.memory_space<vmem>>, %arg5: memref<1x128xf32, #tpu.memory_space<vmem>>, %arg6: memref<128x128xbf16, #tpu.memory_space<vmem>>, %arg7: memref<1x128xf32, #tpu.memory_space<vmem>>, %arg8: memref<128x128xbf16, #tpu.memory_space<vmem>>, %arg9: memref<1x128xf32, #tpu.memory_space<vmem>>, %arg10: memref<8x128xf32, #tpu.memory_space<vmem>>) attributes {dimension_semantics = [#tpu.dimension_semantics<parallel>], iteration_bounds = array<i64: 1>, scalar_prefetch = 0 : i64, scratch_operands = 0 : i64, tpu.core_type = #tpu.core_type<tc>, window_params = [{transform_indices = @transform_0, window_bounds = array<i64: 8, 32>}, {pipeline_mode = #tpu.pipeline_mode<synchronous>, transform_indices = @transform_1, window_bounds = array<i64: 32, 128>}, {pipeline_mode = #tpu.pipeline_mode<synchronous>, transform_indices = @transform_2, window_bounds = array<i64: 1, 128>}, {pipeline_mode = #tpu.pipeline_mode<synchronous>, transform_indices = @transform_3, window_bounds = array<i64: 128, 128>}, {pipeline_mode = #tpu.pipeline_mode<synchronous>, transform_indices = @transform_4, window_bounds = array<i64: 1, 128>}, {pipeline_mode = #tpu.pipeline_mode<synchronous>, transform_indices = @transform_5, window_bounds = array<i64: 128, 128>}, {pipeline_mode = #tpu.pipeline_mode<synchronous>, transform_indices = @transform_6, window_bounds = array<i64: 1, 128>}, {pipeline_mode = #tpu.pipeline_mode<synchronous>, transform_indices = @transform_7, window_bounds = array<i64: 128, 128>}, {pipeline_mode = #tpu.pipeline_mode<synchronous>, transform_indices = @transform_8, window_bounds = array<i64: 1, 128>}, {transform_indices = @transform_9, window_bounds = array<i64: 8, 128>}]} {
    %c0 = arith.constant 0 : index
    %c0_0 = arith.constant 0 : index
    %0 = vector.load %arg1[%c0, %c0_0] : memref<8x32xf32, #tpu.memory_space<vmem>>, vector<8x32xf32>
    %1 = arith.truncf %0 : vector<8x32xf32> to vector<8x32xbf16>
    %c0_1 = arith.constant 0 : index
    %c0_2 = arith.constant 0 : index
    %2 = vector.load %arg2[%c0_1, %c0_2] : memref<32x128xbf16, #tpu.memory_space<vmem>>, vector<32x128xbf16>
    %cst = arith.constant dense<0.000000e+00> : vector<8x128xf32>
    %3 = tpu.matmul %1, %2, %cst {dimension_numbers = #tpu.dot_dimension_numbers<[1], [0], [0], [1], [0, 0, 1, 1], [], []>} : vector<8x32xbf16>, vector<32x128xbf16>, vector<8x128xf32> -> vector<8x128xf32>
    %c0_3 = arith.constant 0 : index
    %c0_4 = arith.constant 0 : index
    %4 = vector.load %arg3[%c0_3, %c0_4] : memref<1x128xf32, #tpu.memory_space<vmem>>, vector<1x128xf32>
    %5 = vector.broadcast %4 : vector<1x128xf32> to vector<8x128xf32>
    %6 = arith.addf %3, %5 : vector<8x128xf32>
    %cst_5 = arith.constant 0.000000e+00 : f32
    %7 = vector.broadcast %cst_5 : f32 to vector<8x128xf32>
    %8 = arith.maximumf %6, %7 : vector<8x128xf32>
    %9 = arith.truncf %8 : vector<8x128xf32> to vector<8x128xbf16>
    %c0_6 = arith.constant 0 : index
    %c0_7 = arith.constant 0 : index
    %10 = vector.load %arg4[%c0_6, %c0_7] : memref<128x128xbf16, #tpu.memory_space<vmem>>, vector<128x128xbf16>
    %cst_8 = arith.constant dense<0.000000e+00> : vector<8x128xf32>
    %11 = tpu.matmul %9, %10, %cst_8 {dimension_numbers = #tpu.dot_dimension_numbers<[1], [0], [0], [1], [0, 0, 1, 1], [], []>} : vector<8x128xbf16>, vector<128x128xbf16>, vector<8x128xf32> -> vector<8x128xf32>
    %c0_9 = arith.constant 0 : index
    %c0_10 = arith.constant 0 : index
    %12 = vector.load %arg5[%c0_9, %c0_10] : memref<1x128xf32, #tpu.memory_space<vmem>>, vector<1x128xf32>
    %13 = vector.broadcast %12 : vector<1x128xf32> to vector<8x128xf32>
    %14 = arith.addf %11, %13 : vector<8x128xf32>
    %cst_11 = arith.constant 0.000000e+00 : f32
    %15 = vector.broadcast %cst_11 : f32 to vector<8x128xf32>
    %16 = arith.maximumf %14, %15 : vector<8x128xf32>
    %17 = arith.truncf %16 : vector<8x128xf32> to vector<8x128xbf16>
    %c0_12 = arith.constant 0 : index
    %c0_13 = arith.constant 0 : index
    %18 = vector.load %arg6[%c0_12, %c0_13] : memref<128x128xbf16, #tpu.memory_space<vmem>>, vector<128x128xbf16>
    %cst_14 = arith.constant dense<0.000000e+00> : vector<8x128xf32>
    %19 = tpu.matmul %17, %18, %cst_14 {dimension_numbers = #tpu.dot_dimension_numbers<[1], [0], [0], [1], [0, 0, 1, 1], [], []>} : vector<8x128xbf16>, vector<128x128xbf16>, vector<8x128xf32> -> vector<8x128xf32>
    %c0_15 = arith.constant 0 : index
    %c0_16 = arith.constant 0 : index
    %20 = vector.load %arg7[%c0_15, %c0_16] : memref<1x128xf32, #tpu.memory_space<vmem>>, vector<1x128xf32>
    %21 = vector.broadcast %20 : vector<1x128xf32> to vector<8x128xf32>
    %22 = arith.addf %19, %21 : vector<8x128xf32>
    %cst_17 = arith.constant 0.000000e+00 : f32
    %23 = vector.broadcast %cst_17 : f32 to vector<8x128xf32>
    %24 = arith.maximumf %22, %23 : vector<8x128xf32>
    %25 = arith.truncf %24 : vector<8x128xf32> to vector<8x128xbf16>
    %c0_18 = arith.constant 0 : index
    %c0_19 = arith.constant 0 : index
    %26 = vector.load %arg8[%c0_18, %c0_19] : memref<128x128xbf16, #tpu.memory_space<vmem>>, vector<128x128xbf16>
    %cst_20 = arith.constant dense<0.000000e+00> : vector<8x128xf32>
    %27 = tpu.matmul %25, %26, %cst_20 {dimension_numbers = #tpu.dot_dimension_numbers<[1], [0], [0], [1], [0, 0, 1, 1], [], []>} : vector<8x128xbf16>, vector<128x128xbf16>, vector<8x128xf32> -> vector<8x128xf32>
    %c0_21 = arith.constant 0 : index
    %c0_22 = arith.constant 0 : index
    %28 = vector.load %arg9[%c0_21, %c0_22] : memref<1x128xf32, #tpu.memory_space<vmem>>, vector<1x128xf32>
    %29 = vector.broadcast %28 : vector<1x128xf32> to vector<8x128xf32>
    %30 = arith.addf %27, %29 : vector<8x128xf32>
    %cst_23 = arith.constant dense<0xFF800000> : vector<8xf32>
    %31 = vector.multi_reduction <maximumf>, %30, %cst_23 [1] : vector<8x128xf32> to vector<8xf32>
    %32 = vector.shape_cast %31 : vector<8xf32> to vector<8x1xf32>
    %33 = vector.broadcast %32 : vector<8x1xf32> to vector<8x128xf32>
    %34 = arith.subf %30, %33 : vector<8x128xf32>
    %35 = math.exp %34 : vector<8x128xf32>
    %cst_24 = arith.constant dense<0.000000e+00> : vector<8xf32>
    %36 = vector.multi_reduction <add>, %35, %cst_24 [1] : vector<8x128xf32> to vector<8xf32>
    %37 = vector.shape_cast %36 : vector<8xf32> to vector<8x1xf32>
    %38 = tpu.reciprocal %37 : vector<8x1xf32> -> vector<8x1xf32>
    %39 = vector.broadcast %38 : vector<8x1xf32> to vector<8x128xf32>
    %40 = arith.mulf %35, %39 : vector<8x128xf32>
    %c0_25 = arith.constant 0 : index
    %c0_26 = arith.constant 0 : index
    %41 = vector.load %arg10[%c0_25, %c0_26] : memref<8x128xf32, #tpu.memory_space<vmem>>, vector<8x128xf32>
    tpu.vector_store %arg10[%c0_25, %c0_26], %40 {strides = array<i32>} : memref<8x128xf32, #tpu.memory_space<vmem>>, vector<8x128xf32>,
    return
  }
  func.func @transform_0(%arg0: i32) -> (i32, i32) {
    %c0_i32 = arith.constant 0 : i32
    %c0_i32_0 = arith.constant 0 : i32
    return %arg0, %c0_i32 : i32, i32
  }
  func.func @transform_1(%arg0: i32) -> (i32, i32) {
    %c0_i32 = arith.constant 0 : i32
    %c0_i32_0 = arith.constant 0 : i32
    %c0_i32_1 = arith.constant 0 : i32
    return %c0_i32, %c0_i32_0 : i32, i32
  }
  func.func @transform_2(%arg0: i32) -> (i32, i32) {
    %c0_i32 = arith.constant 0 : i32
    %c0_i32_0 = arith.constant 0 : i32
    %c0_i32_1 = arith.constant 0 : i32
    return %c0_i32, %c0_i32_0 : i32, i32
  }
  func.func @transform_3(%arg0: i32) -> (i32, i32) {
    %c0_i32 = arith.constant 0 : i32
    %c0_i32_0 = arith.constant 0 : i32
    %c0_i32_1 = arith.constant 0 : i32
    return %c0_i32, %c0_i32_0 : i32, i32
  }
  func.func @transform_4(%arg0: i32) -> (i32, i32) {
    %c0_i32 = arith.constant 0 : i32
    %c0_i32_0 = arith.constant 0 : i32
    %c0_i32_1 = arith.constant 0 : i32
    return %c0_i32, %c0_i32_0 : i32, i32
  }
  func.func @transform_5(%arg0: i32) -> (i32, i32) {
    %c0_i32 = arith.constant 0 : i32
    %c0_i32_0 = arith.constant 0 : i32
    %c0_i32_1 = arith.constant 0 : i32
    return %c0_i32, %c0_i32_0 : i32, i32
  }
  func.func @transform_6(%arg0: i32) -> (i32, i32) {
    %c0_i32 = arith.constant 0 : i32
    %c0_i32_0 = arith.constant 0 : i32
    %c0_i32_1 = arith.constant 0 : i32
    return %c0_i32, %c0_i32_0 : i32, i32
  }
  func.func @transform_7(%arg0: i32) -> (i32, i32) {
    %c0_i32 = arith.constant 0 : i32
    %c0_i32_0 = arith.constant 0 : i32
    %c0_i32_1 = arith.constant 0 : i32
    return %c0_i32, %c0_i32_0 : i32, i32
  }
  func.func @transform_8(%arg0: i32) -> (i32, i32) {
    %c0_i32 = arith.constant 0 : i32
    %c0_i32_0 = arith.constant 0 : i32
    %c0_i32_1 = arith.constant 0 : i32
    return %c0_i32, %c0_i32_0 : i32, i32
  }
  func.func @transform_9(%arg0: i32) -> (i32, i32) {
    %c0_i32 = arith.constant 0 : i32
    %c0_i32_0 = arith.constant 0 : i32
    return %arg0, %c0_i32 : i32, i32
  }
}

</mosaic_0001>

<bundles_post_ra>
// kernel: tpu_custom_call.1
= control target key start
LH: loop header
LB: loop body
LE: loop exit
PB: predicated region body
PF: predicated region fallthrough
CT: control target
= control target key end

     0   :  { %14 = vsyncpa [#allocation3], 0  ;;  %s1034_s0 = inlined_call_operand.hbm [shape: f32[8,32], index: 0, kind: input, shape index: {}]   ;;  %s1035_s1 = inlined_call_operand.hbm [shape: bf16[32,128], index: 1, kind: input, shape index: {}]   ;;  %s1036_s2 = inlined_call_operand.vmem [shape: f32[1,128], index: 2, kind: input, shape index: {}]   ;;  %s1037_s3 = inlined_call_operand.hbm [shape: bf16[128,128], index: 3, kind: input, shape index: {}]   ;;  %s1038_s4 = inlined_call_operand.vmem [shape: f32[1,128], index: 4, kind: input, shape index: {}]   ;;  %s1039_s5 = inlined_call_operand.hbm [shape: bf16[128,128], index: 5, kind: input, shape index: {}]   ;;  %s1040_s6 = inlined_call_operand.vmem [shape: f32[1,128], index: 6, kind: input, shape index: {}]   ;;  %s1041_s7 = inlined_call_operand.hbm [shape: bf16[128,128], index: 7, kind: input, shape index: {}]   ;;  %s1042_s8 = inlined_call_operand.vmem [shape: f32[1,128], index: 8, kind: input, shape index: {}]   ;;  %s1043_s9 = inlined_call_operand.hbm [shape: f32[8,128], index: 9, kind: output, shape index: {}]  }
   0x1   :  { %15 = vsyncpa [#allocation6], 0 }
   0x2   :  { %16 = vsyncpa [#allocation9], 0 }
   0x3   :  { %17 = vsyncpa [#allocation4], 0  ;;  %s844_s30 = smov [#allocation5]   ;;  %s704_s13 = scalar_lea.hbm %s1035_s1, 256 }
   0x4   :  { %s33_s10 = sshll.u32 %s844_s30, 4  ;;  %p705_p0 = scmp.ne.s32.totalorder %s1035_s1, %s704_s13  ;;  %s34_s10 = int_to_ptr.vmem [resolvable:$true] %s33_s10 }
   0x5   :  { %p708_p1 = scmp.lt.u32.totalorder %s704_s13, %s1035_s1 }
   0x7   :  { %p710_p2 = pnand %p708_p1, %p705_p0 }
   0x9   :  { %713 = shalt.err (!%p710_p2)
}
   0xa   :  { %s714_s18 = scalar_lea.vmem %s34_s10, 256  ;;  %p719_p4 = scmp.lt.s32.totalorder %s34_s10, %s34_s10 }
   0xb   :  { %p715_p3 = scmp.ne.s32.totalorder %s34_s10, %s714_s18  ;;  %p720_p5 = scmp.lt.s32.totalorder %s714_s18, %s714_s18 }
   0xd   :  { %p721_p6 = por %p720_p5, %p719_p4 }
   0xf   :  { %p722_p7 = pnand %p721_p6, %p715_p3 }
  0x11   :  { %725 = shalt.err (!%p722_p7)
}
  0x12   :  { %s845_s19 = smov 64   ;;  %s846_s20 = smov 4  }
  0x13   :  { %39 = dma.hbm_to_vmem [thread:$0]  %s1035_s1, 256, %s34_s10, [#allocation6], %s845_s19, %s845_s19, %s846_s20  }
  0x14   :  { %s847_s23 = smov [#allocation8]   ;;  %s848_s25 = smov [#allocation2]  }
  0x15   :  { %s61_s24 = sshll.u32 %s847_s23, 4  ;;  %s24_s26 = sshll.u32 %s848_s25, 4  ;;  %s62_s24 = int_to_ptr.vmem [resolvable:$true] %s61_s24  ;;  %s25_s26 = int_to_ptr.vmem [resolvable:$true] %s24_s26 }
  0x16   :  { %s726_s29 = scalar_lea.hbm %s1039_s5, 1024 }
  0x17   :  { %p727_p8 = scmp.ne.s32.totalorder %s1039_s5, %s726_s29  ;;  %p730_p9 = scmp.lt.u32.totalorder %s726_s29, %s1039_s5 }
  0x19   :  { %p732_p10 = pnand %p730_p9, %p727_p8 }
  0x1b   :  { %735 = shalt.err (!%p732_p10)
}
  0x1c   :  { %s736_s1 = scalar_lea.vmem %s62_s24, 1024  ;;  %p741_p12 = scmp.lt.s32.totalorder %s62_s24, %s62_s24 }
  0x1d   :  { %p737_p11 = scmp.ne.s32.totalorder %s62_s24, %s736_s1  ;;  %p742_p13 = scmp.lt.s32.totalorder %s736_s1, %s736_s1 }
  0x1f   :  { %p743_p0 = por %p742_p13, %p741_p12 }
  0x21   :  { %p744_p1 = pnand %p743_p0, %p737_p11 }
  0x23   :  { %747 = shalt.err (!%p744_p1)
}
  0x24   :  { %67 = dma.hbm_to_vmem [thread:$0]  %s1039_s5, 1024, %s62_s24, [#allocation9], %s845_s19, %s845_s19, %s846_s20  }
  0x25   :  { %s748_s17 = scalar_lea.hbm %s1034_s0, 128 }
  0x26   :  { %p749_p2 = scmp.ne.s32.totalorder %s1034_s0, %s748_s17  ;;  %p752_p3 = scmp.lt.u32.totalorder %s748_s17, %s1034_s0 }
  0x28   :  { %p754_p4 = pnand %p752_p3, %p749_p2 }
  0x2a   :  { %757 = shalt.err (!%p754_p4)
}
  0x2b   :  { %s758_s25 = scalar_lea.vmem %s25_s26, 128  ;;  %p763_p6 = scmp.lt.s32.totalorder %s25_s26, %s25_s26 }
  0x2c   :  { %p759_p5 = scmp.ne.s32.totalorder %s25_s26, %s758_s25  ;;  %p764_p7 = scmp.lt.s32.totalorder %s758_s25, %s758_s25 }
  0x2e   :  { %p765_p8 = por %p764_p7, %p763_p6 }
  0x30   :  { %p766_p9 = pnand %p765_p8, %p759_p5 }
  0x32   :  { %769 = shalt.err (!%p766_p9)
}
  0x33   :  { %27 = dma.hbm_to_vmem [thread:$0]  %s1034_s0, 128, %s25_s26, [#allocation3]  }
  0x34   :  { %s849_s27 = smov [#allocation7]   ;;  %s850_s29 = smov [#allocation10]  }
  0x35   :  { %s47_s28 = sshll.u32 %s849_s27, 4  ;;  %s75_s30 = sshll.u32 %s850_s29, 4  ;;  %s48_s28 = int_to_ptr.vmem [resolvable:$true] %s47_s28  ;;  %s76_s30 = int_to_ptr.vmem [resolvable:$true] %s75_s30 }
  0x36   :  { %s770_s13 = scalar_lea.hbm %s1037_s3, 1024 }
  0x37   :  { %p771_p10 = scmp.ne.s32.totalorder %s1037_s3, %s770_s13  ;;  %p774_p11 = scmp.lt.u32.totalorder %s770_s13, %s1037_s3 }
  0x39   :  { %p776_p12 = pnand %p774_p11, %p771_p10 }
  0x3b   :  { %779 = shalt.err (!%p776_p12)
}
  0x3c   :  { %s780_s0 = scalar_lea.vmem %s48_s28, 1024  ;;  %p785_p0 = scmp.lt.s32.totalorder %s48_s28, %s48_s28 }
  0x3d   :  { %p781_p13 = scmp.ne.s32.totalorder %s48_s28, %s780_s0  ;;  %p786_p1 = scmp.lt.s32.totalorder %s780_s0, %s780_s0 }
  0x3f   :  { %p787_p2 = por %p786_p1, %p785_p0 }
  0x41   :  { %p788_p3 = pnand %p787_p2, %p781_p13 }
  0x43   :  { %791 = shalt.err (!%p788_p3)
}
  0x44   :  { %53 = dma.hbm_to_vmem [thread:$0]  %s1037_s3, 1024, %s48_s28, [#allocation6], %s845_s19, %s845_s19, %s846_s20  }
  0x45   :  { %s792_s21 = scalar_lea.hbm %s1041_s7, 1024 }
  0x46   :  { %p793_p4 = scmp.ne.s32.totalorder %s1041_s7, %s792_s21  ;;  %p796_p5 = scmp.lt.u32.totalorder %s792_s21, %s1041_s7 }
  0x48   :  { %p798_p6 = pnand %p796_p5, %p793_p4 }
  0x4a   :  { %801 = shalt.err (!%p798_p6)
}
  0x4b   :  { %s802_s24 = scalar_lea.vmem %s76_s30, 1024  ;;  %p807_p8 = scmp.lt.s32.totalorder %s76_s30, %s76_s30 }
  0x4c   :  { %p803_p7 = scmp.ne.s32.totalorder %s76_s30, %s802_s24  ;;  %p808_p9 = scmp.lt.s32.totalorder %s802_s24, %s802_s24 }
  0x4e   :  { %p809_p10 = por %p808_p9, %p807_p8 }
  0x50   :  { %p810_p11 = pnand %p809_p10, %p803_p7 }
  0x52   :  { %813 = shalt.err (!%p810_p11)
}
  0x53   :  { %81 = dma.hbm_to_vmem [thread:$0]  %s1041_s7, 1024, %s76_s30, [#allocation9], %s845_s19, %s845_s19, %s846_s20  }
  0x54   :  { %836 = dma.done.wait [#allocation3], 128  }
  0x55   :  { %837 = vsyncadd [#allocation3], 4294967168 }
  0x56   :  { %838 = dma.done.wait [#allocation6], 1280  }
  0x57   :  { %839 = vsyncadd [#allocation6], 4294966016 }
  0x58   :  { %840 = dma.done.wait [#allocation9], 2048  }
  0x59   :  { %841 = vsyncadd [#allocation9], 4294965248  ;;  %v851_v0 = vmov 0.0   ;;  %vm852_vm0 = vmmov 0   ;;  %v674_v1 = vld [vmem:[#allocation5] sm:$0xff]   ;;  %v675_v2 = vld [vmem:[#allocation5 + $0x8] sm:$0xff]  }
  0x5a   :  { %596 = vmatprep.subr.bf16.mxu0 %v851_v0  ;;  %600 = vmatprep.mubr.msk.bf16.mxu0 %vm852_vm0, %v851_v0  ;;  %v100_v3 = vld [vmem:[#allocation2] sm:$0xff]  ;;  %v676_v4 = vld [vmem:[#allocation7] sm:$0xff]   ;;  %vm125_vm1 = vcmask 261120   ;;  %v678_v7 = vld [vmem:[#allocation7 + $0x10] sm:$0xff]  }
  0x5b   :  { %604 = vmatprep.subr.bf16.mxu1 %v851_v0  ;;  %620 = vmatprep.mubr.msk.bf16.mxu1 %vm852_vm0, %v851_v0  ;;  %v101_v5 = vpack.c.bf16 %v100_v3, %v100_v3  ;;  %v677_v6 = vld [vmem:[#allocation7 + $0x8] sm:$0xff]   ;;  %v679_v8 = vld [vmem:[#allocation7 + $0x18] sm:$0xff]   ;;  %v680_v9 = vld [vmem:[#allocation7 + $0x20] sm:$0xff]  }
  0x5c   :  { %597 = vmatpush3.bf16.msra.mxu0 %v674_v1  ;;  %605 = vmatpush3.bf16.msra.mxu1 %v676_v4  ;;  %v681_v10 = vld [vmem:[#allocation7 + $0x28] sm:$0xff]   ;;  %v682_v11 = vld [vmem:[#allocation7 + $0x30] sm:$0xff]   ;;  %v683_v12 = vld [vmem:[#allocation7 + $0x38] sm:$0xff]  }
  0x5d   :  { %598 = vmatprep.subr.bf16.mxu0 %v851_v0  ;;  %606 = vmatprep.subr.bf16.mxu1 %v851_v0  ;;  %v684_v13 = vld [vmem:[#allocation8] sm:$0xff]   ;;  %v685_v14 = vld [vmem:[#allocation8 + $0x8] sm:$0xff]   ;;  %v686_v15 = vld [vmem:[#allocation8 + $0x10] sm:$0xff]  }
  0x5e   :  { %v687_v16 = vld [vmem:[#allocation8 + $0x18] sm:$0xff]   ;;  %v688_v17 = vld [vmem:[#allocation8 + $0x20] sm:$0xff]   ;;  %v689_v18 = vld [vmem:[#allocation8 + $0x28] sm:$0xff]  }
  0x5f   :  { %v535_v19 = vld [vmem:[%s1036_s2] ss:$0 sm:$0xff]  ;;  %v690_v27 = vld [vmem:[#allocation8 + $0x30] sm:$0xff]   ;;  %v691_v28 = vld [vmem:[#allocation8 + $0x38] sm:$0xff]  }
  0x60   :  { %599 = vmatpush3.bf16.msra.mxu0 %v675_v2  ;;  %607 = vmatpush3.bf16.msra.mxu1 %v677_v6  ;;  %v692_v29 = vld [vmem:[#allocation10] sm:$0xff]   ;;  %v693_v30 = vld [vmem:[#allocation10 + $0x8] sm:$0xff]   ;;  %v694_v31 = vld [vmem:[#allocation10 + $0x10] sm:$0xff]  }
  0x61   :  { %624 = vmatprep.subr.bf16.mxu0 %v851_v0  ;;  %608 = vmatprep.subr.bf16.mxu1 %v851_v0  ;;  %v695_v32 = vld [vmem:[#allocation10 + $0x18] sm:$0xff]   ;;  %v696_v33 = vld [vmem:[#allocation10 + $0x20] sm:$0xff]   ;;  %v697_v34 = vld [vmem:[#allocation10 + $0x28] sm:$0xff]  }
  0x62   :  { %v539_v35 = vld [vmem:[%s1038_s4] ss:$0 sm:$0xff]  ;;  %v698_v43 = vld [vmem:[#allocation10 + $0x30] sm:$0xff]   ;;  %v699_v44 = vld [vmem:[#allocation10 + $0x38] sm:$0xff]  }
  0x63   :  { %601 = vmatmul.mubr.msk.bf16.vlgmr.msra.gmra.mrb[0].mxu0 %vm125_vm1, %v101_v5  ;;  %v548_v45 = vld [vmem:[%s1040_s6] ss:$0 sm:$0xff]  ;;  %s853_s6 = smov [#allocation11]  }
  0x64   :  { %640 = vmatprep.mubr.msk.bf16.mxu0 %vm852_vm0, %v851_v0  ;;  %609 = vmatpush3.bf16.msra.mxu1 %v678_v7  ;;  %v557_v53 = vld [vmem:[%s1042_s8] ss:$0 sm:$0xff]  ;;  %s524_s11 = sshll.u32 %s853_s6, 4  ;;  %s525_s11 = int_to_ptr.vmem [resolvable:$true] %s524_s11 }
  0x65   :  { %610 = vmatprep.subr.bf16.mxu1 %v851_v0  ;;  %625 = vmatpush3.bf16.msra.mxu0 %v684_v13  ;;  %s814_s8 = scalar_lea.vmem %s525_s11, 128  ;;  %p819_p13 = scmp.lt.s32.totalorder %s525_s11, %s525_s11 }
  0x66   :  { %626 = vmatprep.subr.bf16.mxu0 %v851_v0  ;;  %p815_p12 = scmp.ne.s32.totalorder %s525_s11, %s814_s8  ;;  %p820_p0 = scmp.lt.s32.totalorder %s814_s8, %s814_s8 }
  0x68   :  { %611 = vmatpush3.bf16.msra.mxu1 %v679_v8  ;;  %p821_p1 = por %p820_p0, %p819_p13 }
  0x69   :  { %612 = vmatprep.subr.bf16.mxu1 %v851_v0  ;;  %627 = vmatpush3.bf16.msra.mxu0 %v685_v14 }
  0x6a   :  { %628 = vmatprep.subr.bf16.mxu0 %v851_v0  ;;  %p822_p2 = pnand %p821_p1, %p815_p12 }
  0x6c   :  { %613 = vmatpush3.bf16.msra.mxu1 %v680_v9 }
  0x6d   :  { %614 = vmatprep.subr.bf16.mxu1 %v851_v0  ;;  %629 = vmatpush3.bf16.msra.mxu0 %v686_v15 }
  0x6e   :  { %630 = vmatprep.subr.bf16.mxu0 %v851_v0 }
  0x70   :  { %615 = vmatpush3.bf16.msra.mxu1 %v681_v10 }
  0x71   :  { %616 = vmatprep.subr.bf16.mxu1 %v851_v0  ;;  %631 = vmatpush3.bf16.msra.mxu0 %v687_v16 }
  0x72   :  { %632 = vmatprep.subr.bf16.mxu0 %v851_v0 }
  0x74   :  { %617 = vmatpush3.bf16.msra.mxu1 %v682_v11 }
  0x75   :  { %618 = vmatprep.subr.bf16.mxu1 %v851_v0  ;;  %633 = vmatpush3.bf16.msra.mxu0 %v688_v17 }
  0x76   :  { %634 = vmatprep.subr.bf16.mxu0 %v851_v0 }
  0x78   :  { %619 = vmatpush3.bf16.msra.mxu1 %v683_v12 }
  0x79   :  { %644 = vmatprep.subr.bf16.mxu1 %v851_v0  ;;  %635 = vmatpush3.bf16.msra.mxu0 %v689_v18 }
  0x7a   :  { %636 = vmatprep.subr.bf16.mxu0 %v851_v0 }
  0x7d   :  { %637 = vmatpush3.bf16.msra.mxu0 %v690_v27 }
  0x7e   :  { %638 = vmatprep.subr.bf16.mxu0 %v851_v0 }
  0x81   :  { %639 = vmatpush3.bf16.msra.mxu0 %v691_v28 }
 0x136   :  { %v163_v20 = vpop.f32.mrb[0].mxu0 }
 0x137   :  { %v164_v21 = vadd.f32 %v535_v19, %v163_v20  ;;  %v602_v22 = vpop.f32.mrb[1].mxu0 }
 0x138   :  { %v166_v23 = vpop.f32.mrb[2].mxu0 }
 0x139   :  { %v169_v24 = vmax.f32 %v164_v21, 0.0  ;;  %v603_v25 = vpop.f32.mrb[3].mxu0 }
 0x13b   :  { %v170_v26 = vpack.c.bf16 %v169_v24, %v169_v24 }
 0x13d   :  { %621 = vmatmul.mubr.bf16.vlgmr.msra.gmra.mrb[0].mxu1 %v170_v26 }
 0x13e   :  { %660 = vmatprep.mubr.msk.bf16.mxu1 %vm852_vm0, %v851_v0  ;;  %645 = vmatpush3.bf16.msra.mxu1 %v692_v29 }
 0x13f   :  { %646 = vmatprep.subr.bf16.mxu1 %v851_v0 }
 0x142   :  { %647 = vmatpush3.bf16.msra.mxu1 %v693_v30 }
 0x143   :  { %648 = vmatprep.subr.bf16.mxu1 %v851_v0 }
 0x146   :  { %649 = vmatpush3.bf16.msra.mxu1 %v694_v31 }
 0x147   :  { %650 = vmatprep.subr.bf16.mxu1 %v851_v0 }
 0x14a   :  { %651 = vmatpush3.bf16.msra.mxu1 %v695_v32 }
 0x14b   :  { %652 = vmatprep.subr.bf16.mxu1 %v851_v0 }
 0x14e   :  { %653 = vmatpush3.bf16.msra.mxu1 %v696_v33 }
 0x14f   :  { %654 = vmatprep.subr.bf16.mxu1 %v851_v0 }
 0x152   :  { %655 = vmatpush3.bf16.msra.mxu1 %v697_v34 }
 0x153   :  { %656 = vmatprep.subr.bf16.mxu1 %v851_v0 }
 0x156   :  { %657 = vmatpush3.bf16.msra.mxu1 %v698_v43 }
 0x157   :  { %658 = vmatprep.subr.bf16.mxu1 %v851_v0 }
 0x15a   :  { %659 = vmatpush3.bf16.msra.mxu1 %v699_v44 }
 0x210   :  { %v276_v36 = vpop.f32.mrb[0].mxu1 }
 0x211   :  { %v277_v37 = vadd.f32 %v539_v35, %v276_v36  ;;  %v622_v38 = vpop.f32.mrb[1].mxu1 }
 0x212   :  { %v279_v39 = vpop.f32.mrb[2].mxu1 }
 0x213   :  { %v282_v40 = vmax.f32 %v277_v37, 0.0  ;;  %v623_v41 = vpop.f32.mrb[3].mxu1 }
 0x215   :  { %v283_v42 = vpack.c.bf16 %v282_v40, %v282_v40 }
 0x217   :  { %641 = vmatmul.mubr.bf16.vlgmr.msra.gmra.mrb[4].mxu0 %v283_v42 }
 0x2ea   :  { %v389_v46 = vpop.f32.mrb[4].mxu0 }
 0x2eb   :  { %v390_v47 = vadd.f32 %v548_v45, %v389_v46  ;;  %v642_v48 = vpop.f32.mrb[5].mxu0 }
 0x2ec   :  { %v392_v49 = vpop.f32.mrb[6].mxu0 }
 0x2ed   :  { %v395_v50 = vmax.f32 %v390_v47, 0.0  ;;  %v643_v51 = vpop.f32.mrb[7].mxu0 }
 0x2ef   :  { %v396_v52 = vpack.c.bf16 %v395_v50, %v395_v50 }
 0x2f1   :  { %661 = vmatmul.mubr.bf16.vlgmr.msra.gmra.mrb[4].mxu1 %v396_v52 }
 0x3c4   :  { %v502_v54 = vpop.f32.mrb[4].mxu1 }
 0x3c5   :  { %v503_v55 = vadd.f32 %v557_v53, %v502_v54  ;;  %v662_v56 = vpop.f32.mrb[5].mxu1 }
 0x3c6   :  { %v505_v57 = vpop.f32.mrb[6].mxu1 }
 0x3c7   :  { %508 = vmax.xlane.f32.xlu0 %v503_v55  ;;  %v663_v58 = vpop.f32.mrb[7].mxu1 }
 0x454   :  { %v509_v59 = vpop.xlane.xlu0 %508 }
 0x455   :  { %v510_v60 = vsub.f32 %v503_v55, %v509_v59 }
 0x457   :  { %v511_v61 = vmul.f32 1.442695, %v510_v60 }
 0x459   :  { %700 = vpow2.f32 %v511_v61 }
 0x463   :  { %v701_v62 = vpop.eup %700 }
 0x464   :  { %513 = vadd.xlane.f32.xlu0 %v701_v62 }
 0x4f1   :  { %v514_v63 = vpop.xlane.xlu0 %513 }
 0x4f2   :  { %702 = vrcp.f32 %v514_v63 }
 0x4fc   :  { %v703_v0 = vpop.eup %702 }
 0x4fd   :  { %v516_v1 = vmul.f32 %v703_v0, %v701_v62 }
 0x4ff   :  { %517 = vst [vmem:[#allocation11] sm:$0xff] %v516_v1 }
 0x500   :  { %825 = shalt.err (!%p822_p2)
}
 0x501   :  { %s826_s1 = scalar_lea.hbm %s1043_s9, 128 }
 0x502   :  { %p827_p3 = scmp.ne.s32.totalorder %s1043_s9, %s826_s1  ;;  %p830_p4 = scmp.lt.u32.totalorder %s826_s1, %s1043_s9 }
 0x504   :  { %p832_p5 = pnand %p830_p4, %p827_p3 }
 0x506   :  { %835 = shalt.err (!%p832_p5)
}
 0x507   :  { %527 = dma.vmem_to_hbm [thread:$0]  %s525_s11, 128, %s1043_s9, [#allocation4]  }
 0x508   :  { %842 = dma.done.wait [#allocation4], 128  }
 0x509   :  { %843 = vsyncadd [#allocation4], 4294967168 }
 0x50a   :  { %531 = vsyncpa [#allocation3], 1 }
 0x50b   :  { %532 = vsyncpa [#allocation6], 1 }
 0x50c   :  { %533 = vsyncpa [#allocation9], 1 }
 0x50d   :  { %534 = vsyncpa [#allocation4], 1 }

// kernel: tpu_custom_call.1
= control target key start
LH: loop header
LB: loop body
LE: loop exit
PB: predicated region body
PF: predicated region fallthrough
CT: control target
= control target key end

     0   :  { %14 = vsyncpa [#allocation3], 0  ;;  %s1034_s0 = inlined_call_operand.hbm [shape: f32[8,32], index: 0, kind: input, shape index: {}]   ;;  %s1035_s1 = inlined_call_operand.hbm [shape: bf16[32,128], index: 1, kind: input, shape index: {}]   ;;  %s1036_s2 = inlined_call_operand.vmem [shape: f32[1,128], index: 2, kind: input, shape index: {}]   ;;  %s1037_s3 = inlined_call_operand.hbm [shape: bf16[128,128], index: 3, kind: input, shape index: {}]   ;;  %s1038_s4 = inlined_call_operand.vmem [shape: f32[1,128], index: 4, kind: input, shape index: {}]   ;;  %s1039_s5 = inlined_call_operand.hbm [shape: bf16[128,128], index: 5, kind: input, shape index: {}]   ;;  %s1040_s6 = inlined_call_operand.vmem [shape: f32[1,128], index: 6, kind: input, shape index: {}]   ;;  %s1041_s7 = inlined_call_operand.hbm [shape: bf16[128,128], index: 7, kind: input, shape index: {}]   ;;  %s1042_s8 = inlined_call_operand.vmem [shape: f32[1,128], index: 8, kind: input, shape index: {}]   ;;  %s1043_s9 = inlined_call_operand.hbm [shape: f32[8,128], index: 9, kind: output, shape index: {}]  }
   0x1   :  { %15 = vsyncpa [#allocation6], 0 }
   0x2   :  { %16 = vsyncpa [#allocation9], 0 }
   0x3   :  { %17 = vsyncpa [#allocation4], 0  ;;  %s844_s30 = smov [#allocation5]   ;;  %s704_s13 = scalar_lea.hbm %s1035_s1, 256 }
   0x4   :  { %s33_s10 = sshll.u32 %s844_s30, 4  ;;  %p705_p0 = scmp.ne.s32.totalorder %s1035_s1, %s704_s13  ;;  %s34_s10 = int_to_ptr.vmem [resolvable:$true] %s33_s10 }
   0x5   :  { %p708_p1 = scmp.lt.u32.totalorder %s704_s13, %s1035_s1 }
   0x7   :  { %p710_p2 = pnand %p708_p1, %p705_p0 }
   0x9   :  { %713 = shalt.err (!%p710_p2)
}
   0xa   :  { %s714_s18 = scalar_lea.vmem %s34_s10, 256  ;;  %p719_p4 = scmp.lt.s32.totalorder %s34_s10, %s34_s10 }
   0xb   :  { %p715_p3 = scmp.ne.s32.totalorder %s34_s10, %s714_s18  ;;  %p720_p5 = scmp.lt.s32.totalorder %s714_s18, %s714_s18 }
   0xd   :  { %p721_p6 = por %p720_p5, %p719_p4 }
   0xf   :  { %p722_p7 = pnand %p721_p6, %p715_p3 }
  0x11   :  { %725 = shalt.err (!%p722_p7)
}
  0x12   :  { %s845_s19 = smov 64   ;;  %s846_s20 = smov 4  }
  0x13   :  { %39 = dma.hbm_to_vmem [thread:$0]  %s1035_s1, 256, %s34_s10, [#allocation6], %s845_s19, %s845_s19, %s846_s20  }
  0x14   :  { %s847_s23 = smov [#allocation8]   ;;  %s848_s25 = smov [#allocation2]  }
  0x15   :  { %s61_s24 = sshll.u32 %s847_s23, 4  ;;  %s24_s26 = sshll.u32 %s848_s25, 4  ;;  %s62_s24 = int_to_ptr.vmem [resolvable:$true] %s61_s24  ;;  %s25_s26 = int_to_ptr.vmem [resolvable:$true] %s24_s26 }
  0x16   :  { %s726_s29 = scalar_lea.hbm %s1039_s5, 1024 }
  0x17   :  { %p727_p8 = scmp.ne.s32.totalorder %s1039_s5, %s726_s29  ;;  %p730_p9 = scmp.lt.u32.totalorder %s726_s29, %s1039_s5 }
  0x19   :  { %p732_p10 = pnand %p730_p9, %p727_p8 }
  0x1b   :  { %735 = shalt.err (!%p732_p10)
}
  0x1c   :  { %s736_s1 = scalar_lea.vmem %s62_s24, 1024  ;;  %p741_p12 = scmp.lt.s32.totalorder %s62_s24, %s62_s24 }
  0x1d   :  { %p737_p11 = scmp.ne.s32.totalorder %s62_s24, %s736_s1  ;;  %p742_p13 = scmp.lt.s32.totalorder %s736_s1, %s736_s1 }
  0x1f   :  { %p743_p0 = por %p742_p13, %p741_p12 }
  0x21   :  { %p744_p1 = pnand %p743_p0, %p737_p11 }
  0x23   :  { %747 = shalt.err (!%p744_p1)
}
  0x24   :  { %67 = dma.hbm_to_vmem [thread:$0]  %s1039_s5, 1024, %s62_s24, [#allocation9], %s845_s19, %s845_s19, %s846_s20  }
  0x25   :  { %s748_s17 = scalar_lea.hbm %s1034_s0, 128 }
  0x26   :  { %p749_p2 = scmp.ne.s32.totalorder %s1034_s0, %s748_s17  ;;  %p752_p3 = scmp.lt.u32.totalorder %s748_s17, %s1034_s0 }
  0x28   :  { %p754_p4 = pnand %p752_p3, %p749_p2 }
  0x2a   :  { %757 = shalt.err (!%p754_p4)
}
  0x2b   :  { %s758_s25 = scalar_lea.vmem %s25_s26, 128  ;;  %p763_p6 = scmp.lt.s32.totalorder %s25_s26, %s25_s26 }
  0x2c   :  { %p759_p5 = scmp.ne.s32.totalorder %s25_s26, %s758_s25  ;;  %p764_p7 = scmp.lt.s32.totalorder %s758_s25, %s758_s25 }
  0x2e   :  { %p765_p8 = por %p764_p7, %p763_p6 }
  0x30   :  { %p766_p9 = pnand %p765_p8, %p759_p5 }
  0x32   :  { %769 = shalt.err (!%p766_p9)
}
  0x33   :  { %27 = dma.hbm_to_vmem [thread:$0]  %s1034_s0, 128, %s25_s26, [#allocation3]  }
  0x34   :  { %s849_s27 = smov [#allocation7]   ;;  %s850_s29 = smov [#allocation10]  }
  0x35   :  { %s47_s28 = sshll.u32 %s849_s27, 4  ;;  %s75_s30 = sshll.u32 %s850_s29, 4  ;;  %s48_s28 = int_to_ptr.vmem [resolvable:$true] %s47_s28  ;;  %s76_s30 = int_to_ptr.vmem [resolvable:$true] %s75_s30 }
  0x36   :  { %s770_s13 = scalar_lea.hbm %s1037_s3, 1024 }
  0x37   :  { %p771_p10 = scmp.ne.s32.totalorder %s1037_s3, %s770_s13  ;;  %p774_p11 = scmp.lt.u32.totalorder %s770_s13, %s1037_s3 }
  0x39   :  { %p776_p12 = pnand %p774_p11, %p771_p10 }
  0x3b   :  { %779 = shalt.err (!%p776_p12)
}
  0x3c   :  { %s780_s0 = scalar_lea.vmem %s48_s28, 1024  ;;  %p785_p0 = scmp.lt.s32.totalorder %s48_s28, %s48_s28 }
  0x3d   :  { %p781_p13 = scmp.ne.s32.totalorder %s48_s28, %s780_s0  ;;  %p786_p1 = scmp.lt.s32.totalorder %s780_s0, %s780_s0 }
  0x3f   :  { %p787_p2 = por %p786_p1, %p785_p0 }
  0x41   :  { %p788_p3 = pnand %p787_p2, %p781_p13 }
  0x43   :  { %791 = shalt.err (!%p788_p3)
}
  0x44   :  { %53 = dma.hbm_to_vmem [thread:$0]  %s1037_s3, 1024, %s48_s28, [#allocation6], %s845_s19, %s845_s19, %s846_s20  }
  0x45   :  { %s792_s21 = scalar_lea.hbm %s1041_s7, 1024 }
  0x46   :  { %p793_p4 = scmp.ne.s32.totalorder %s1041_s7, %s792_s21  ;;  %p796_p5 = scmp.lt.u32.totalorder %s792_s21, %s1041_s7 }
  0x48   :  { %p798_p6 = pnand %p796_p5, %p793_p4 }
  0x4a   :  { %801 = shalt.err (!%p798_p6)
}
  0x4b   :  { %s802_s24 = scalar_lea.vmem %s76_s30, 1024  ;;  %p807_p8 = scmp.lt.s32.totalorder %s76_s30, %s76_s30 }
  0x4c   :  { %p803_p7 = scmp.ne.s32.totalorder %s76_s30, %s802_s24  ;;  %p808_p9 = scmp.lt.s32.totalorder %s802_s24, %s802_s24 }
  0x4e   :  { %p809_p10 = por %p808_p9, %p807_p8 }
  0x50   :  { %p810_p11 = pnand %p809_p10, %p803_p7 }
  0x52   :  { %813 = shalt.err (!%p810_p11)
}
  0x53   :  { %81 = dma.hbm_to_vmem [thread:$0]  %s1041_s7, 1024, %s76_s30, [#allocation9], %s845_s19, %s845_s19, %s846_s20  }
  0x54   :  { %836 = dma.done.wait [#allocation3], 128  }
  0x55   :  { %837 = vsyncadd [#allocation3], 4294967168 }
  0x56   :  { %838 = dma.done.wait [#allocation6], 1280  }
  0x57   :  { %839 = vsyncadd [#allocation6], 4294966016 }
  0x58   :  { %840 = dma.done.wait [#allocation9], 2048  }
  0x59   :  { %841 = vsyncadd [#allocation9], 4294965248  ;;  %v851_v0 = vmov 0.0   ;;  %vm852_vm0 = vmmov 0   ;;  %v674_v1 = vld [vmem:[#allocation5] sm:$0xff]   ;;  %v675_v2 = vld [vmem:[#allocation5 + $0x8] sm:$0xff]  }
  0x5a   :  { %596 = vmatprep.subr.bf16.mxu0 %v851_v0  ;;  %600 = vmatprep.mubr.msk.bf16.mxu0 %vm852_vm0, %v851_v0  ;;  %v100_v3 = vld [vmem:[#allocation2] sm:$0xff]  ;;  %v676_v4 = vld [vmem:[#allocation7] sm:$0xff]   ;;  %vm125_vm1 = vcmask 261120   ;;  %v678_v7 = vld [vmem:[#allocation7 + $0x10] sm:$0xff]  }
  0x5b   :  { %604 = vmatprep.subr.bf16.mxu1 %v851_v0  ;;  %620 = vmatprep.mubr.msk.bf16.mxu1 %vm852_vm0, %v851_v0  ;;  %v101_v5 = vpack.c.bf16 %v100_v3, %v100_v3  ;;  %v677_v6 = vld [vmem:[#allocation7 + $0x8] sm:$0xff]   ;;  %v679_v8 = vld [vmem:[#allocation7 + $0x18] sm:$0xff]   ;;  %v680_v9 = vld [vmem:[#allocation7 + $0x20] sm:$0xff]  }
  0x5c   :  { %597 = vmatpush3.bf16.msra.mxu0 %v674_v1  ;;  %605 = vmatpush3.bf16.msra.mxu1 %v676_v4  ;;  %v681_v10 = vld [vmem:[#allocation7 + $0x28] sm:$0xff]   ;;  %v682_v11 = vld [vmem:[#allocation7 + $0x30] sm:$0xff]   ;;  %v683_v12 = vld [vmem:[#allocation7 + $0x38] sm:$0xff]  }
  0x5d   :  { %598 = vmatprep.subr.bf16.mxu0 %v851_v0  ;;  %606 = vmatprep.subr.bf16.mxu1 %v851_v0  ;;  %v684_v13 = vld [vmem:[#allocation8] sm:$0xff]   ;;  %v685_v14 = vld [vmem:[#allocation8 + $0x8] sm:$0xff]   ;;  %v686_v15 = vld [vmem:[#allocation8 + $0x10] sm:$0xff]  }
  0x5e   :  { %v687_v16 = vld [vmem:[#allocation8 + $0x18] sm:$0xff]   ;;  %v688_v17 = vld [vmem:[#allocation8 + $0x20] sm:$0xff]   ;;  %v689_v18 = vld [vmem:[#allocation8 + $0x28] sm:$0xff]  }
  0x5f   :  { %v535_v19 = vld [vmem:[%s1036_s2] ss:$0 sm:$0xff]  ;;  %v690_v27 = vld [vmem:[#allocation8 + $0x30] sm:$0xff]   ;;  %v691_v28 = vld [vmem:[#allocation8 + $0x38] sm:$0xff]  }
  0x60   :  { %599 = vmatpush3.bf16.msra.mxu0 %v675_v2  ;;  %607 = vmatpush3.bf16.msra.mxu1 %v677_v6  ;;  %v692_v29 = vld [vmem:[#allocation10] sm:$0xff]   ;;  %v693_v30 = vld [vmem:[#allocation10 + $0x8] sm:$0xff]   ;;  %v694_v31 = vld [vmem:[#allocation10 + $0x10] sm:$0xff]  }
  0x61   :  { %624 = vmatprep.subr.bf16.mxu0 %v851_v0  ;;  %608 = vmatprep.subr.bf16.mxu1 %v851_v0  ;;  %v695_v32 = vld [vmem:[#allocation10 + $0x18] sm:$0xff]   ;;  %v696_v33 = vld [vmem:[#allocation10 + $0x20] sm:$0xff]   ;;  %v697_v34 = vld [vmem:[#allocation10 + $0x28] sm:$0xff]  }
  0x62   :  { %v539_v35 = vld [vmem:[%s1038_s4] ss:$0 sm:$0xff]  ;;  %v698_v43 = vld [vmem:[#allocation10 + $0x30] sm:$0xff]   ;;  %v699_v44 = vld [vmem:[#allocation10 + $0x38] sm:$0xff]  }
  0x63   :  { %601 = vmatmul.mubr.msk.bf16.vlgmr.msra.gmra.mrb[0].mxu0 %vm125_vm1, %v101_v5  ;;  %v548_v45 = vld [vmem:[%s1040_s6] ss:$0 sm:$0xff]  ;;  %s853_s6 = smov [#allocation11]  }
  0x64   :  { %640 = vmatprep.mubr.msk.bf16.mxu0 %vm852_vm0, %v851_v0  ;;  %609 = vmatpush3.bf16.msra.mxu1 %v678_v7  ;;  %v557_v53 = vld [vmem:[%s1042_s8] ss:$0 sm:$0xff]  ;;  %s524_s11 = sshll.u32 %s853_s6, 4  ;;  %s525_s11 = int_to_ptr.vmem [resolvable:$true] %s524_s11 }
  0x65   :  { %610 = vmatprep.subr.bf16.mxu1 %v851_v0  ;;  %625 = vmatpush3.bf16.msra.mxu0 %v684_v13  ;;  %s814_s8 = scalar_lea.vmem %s525_s11, 128  ;;  %p819_p13 = scmp.lt.s32.totalorder %s525_s11, %s525_s11 }
  0x66   :  { %626 = vmatprep.subr.bf16.mxu0 %v851_v0  ;;  %p815_p12 = scmp.ne.s32.totalorder %s525_s11, %s814_s8  ;;  %p820_p0 = scmp.lt.s32.totalorder %s814_s8, %s814_s8 }
  0x68   :  { %611 = vmatpush3.bf16.msra.mxu1 %v679_v8  ;;  %p821_p1 = por %p820_p0, %p819_p13 }
  0x69   :  { %612 = vmatprep.subr.bf16.mxu1 %v851_v0  ;;  %627 = vmatpush3.bf16.msra.mxu0 %v685_v14 }
  0x6a   :  { %628 = vmatprep.subr.bf16.mxu0 %v851_v0  ;;  %p822_p2 = pnand %p821_p1, %p815_p12 }
  0x6c   :  { %613 = vmatpush3.bf16.msra.mxu1 %v680_v9 }
  0x6d   :  { %614 = vmatprep.subr.bf16.mxu1 %v851_v0  ;;  %629 = vmatpush3.bf16.msra.mxu0 %v686_v15 }
  0x6e   :  { %630 = vmatprep.subr.bf16.mxu0 %v851_v0 }
  0x70   :  { %615 = vmatpush3.bf16.msra.mxu1 %v681_v10 }
  0x71   :  { %616 = vmatprep.subr.bf16.mxu1 %v851_v0  ;;  %631 = vmatpush3.bf16.msra.mxu0 %v687_v16 }
  0x72   :  { %632 = vmatprep.subr.bf16.mxu0 %v851_v0 }
  0x74   :  { %617 = vmatpush3.bf16.msra.mxu1 %v682_v11 }
  0x75   :  { %618 = vmatprep.subr.bf16.mxu1 %v851_v0  ;;  %633 = vmatpush3.bf16.msra.mxu0 %v688_v17 }
  0x76   :  { %634 = vmatprep.subr.bf16.mxu0 %v851_v0 }
  0x78   :  { %619 = vmatpush3.bf16.msra.mxu1 %v683_v12 }
  0x79   :  { %644 = vmatprep.subr.bf16.mxu1 %v851_v0  ;;  %635 = vmatpush3.bf16.msra.mxu0 %v689_v18 }
  0x7a   :  { %636 = vmatprep.subr.bf16.mxu0 %v851_v0 }
  0x7d   :  { %637 = vmatpush3.bf16.msra.mxu0 %v690_v27 }
  0x7e   :  { %638 = vmatprep.subr.bf16.mxu0 %v851_v0 }
  0x81   :  { %639 = vmatpush3.bf16.msra.mxu0 %v691_v28 }
 0x136   :  { %v163_v20 = vpop.f32.mrb[0].mxu0 }
 0x137   :  { %v164_v21 = vadd.f32 %v535_v19, %v163_v20  ;;  %v602_v22 = vpop.f32.mrb[1].mxu0 }
 0x138   :  { %v166_v23 = vpop.f32.mrb[2].mxu0 }
 0x139   :  { %v169_v24 = vmax.f32 %v164_v21, 0.0  ;;  %v603_v25 = vpop.f32.mrb[3].mxu0 }
 0x13b   :  { %v170_v26 = vpack.c.bf16 %v169_v24, %v169_v24 }
 0x13d   :  { %621 = vmatmul.mubr.bf16.vlgmr.msra.gmra.mrb[0].mxu1 %v170_v26 }
 0x13e   :  { %660 = vmatprep.mubr.msk.bf16.mxu1 %vm852_vm0, %v851_v0  ;;  %645 = vmatpush3.bf16.msra.mxu1 %v692_v29 }
 0x13f   :  { %646 = vmatprep.subr.bf16.mxu1 %v851_v0 }
 0x142   :  { %647 = vmatpush3.bf16.msra.mxu1 %v693_v30 }
 0x143   :  { %648 = vmatprep.subr.bf16.mxu1 %v851_v0 }
 0x146   :  { %649 = vmatpush3.bf16.msra.mxu1 %v694_v31 }
 0x147   :  { %650 = vmatprep.subr.bf16.mxu1 %v851_v0 }
 0x14a   :  { %651 = vmatpush3.bf16.msra.mxu1 %v695_v32 }
 0x14b   :  { %652 = vmatprep.subr.bf16.mxu1 %v851_v0 }
 0x14e   :  { %653 = vmatpush3.bf16.msra.mxu1 %v696_v33 }
 0x14f   :  { %654 = vmatprep.subr.bf16.mxu1 %v851_v0 }
 0x152   :  { %655 = vmatpush3.bf16.msra.mxu1 %v697_v34 }
 0x153   :  { %656 = vmatprep.subr.bf16.mxu1 %v851_v0 }
 0x156   :  { %657 = vmatpush3.bf16.msra.mxu1 %v698_v43 }
 0x157   :  { %658 = vmatprep.subr.bf16.mxu1 %v851_v0 }
 0x15a   :  { %659 = vmatpush3.bf16.msra.mxu1 %v699_v44 }
 0x210   :  { %v276_v36 = vpop.f32.mrb[0].mxu1 }
 0x211   :  { %v277_v37 = vadd.f32 %v539_v35, %v276_v36  ;;  %v622_v38 = vpop.f32.mrb[1].mxu1 }
 0x212   :  { %v279_v39 = vpop.f32.mrb[2].mxu1 }
 0x213   :  { %v282_v40 = vmax.f32 %v277_v37, 0.0  ;;  %v623_v41 = vpop.f32.mrb[3].mxu1 }
 0x215   :  { %v283_v42 = vpack.c.bf16 %v282_v40, %v282_v40 }
 0x217   :  { %641 = vmatmul.mubr.bf16.vlgmr.msra.gmra.mrb[4].mxu0 %v283_v42 }
 0x2ea   :  { %v389_v46 = vpop.f32.mrb[4].mxu0 }
 0x2eb   :  { %v390_v47 = vadd.f32 %v548_v45, %v389_v46  ;;  %v642_v48 = vpop.f32.mrb[5].mxu0 }
 0x2ec   :  { %v392_v49 = vpop.f32.mrb[6].mxu0 }
 0x2ed   :  { %v395_v50 = vmax.f32 %v390_v47, 0.0  ;;  %v643_v51 = vpop.f32.mrb[7].mxu0 }
 0x2ef   :  { %v396_v52 = vpack.c.bf16 %v395_v50, %v395_v50 }
 0x2f1   :  { %661 = vmatmul.mubr.bf16.vlgmr.msra.gmra.mrb[4].mxu1 %v396_v52 }
 0x3c4   :  { %v502_v54 = vpop.f32.mrb[4].mxu1 }
 0x3c5   :  { %v503_v55 = vadd.f32 %v557_v53, %v502_v54  ;;  %v662_v56 = vpop.f32.mrb[5].mxu1 }
 0x3c6   :  { %v505_v57 = vpop.f32.mrb[6].mxu1 }
 0x3c7   :  { %508 = vmax.xlane.f32.xlu0 %v503_v55  ;;  %v663_v58 = vpop.f32.mrb[7].mxu1 }
 0x454   :  { %v509_v59 = vpop.xlane.xlu0 %508 }
 0x455   :  { %v510_v60 = vsub.f32 %v503_v55, %v509_v59 }
 0x457   :  { %v511_v61 = vmul.f32 1.442695, %v510_v60 }
 0x459   :  { %700 = vpow2.f32 %v511_v61 }
 0x463   :  { %v701_v62 = vpop.eup %700 }
 0x464   :  { %513 = vadd.xlane.f32.xlu0 %v701_v62 }
 0x4f1   :  { %v514_v63 = vpop.xlane.xlu0 %513 }
 0x4f2   :  { %702 = vrcp.f32 %v514_v63 }
 0x4fc   :  { %v703_v0 = vpop.eup %702 }
 0x4fd   :  { %v516_v1 = vmul.f32 %v703_v0, %v701_v62 }
 0x4ff   :  { %517 = vst [vmem:[#allocation11] sm:$0xff] %v516_v1 }
 0x500   :  { %825 = shalt.err (!%p822_p2)
}
 0x501   :  { %s826_s1 = scalar_lea.hbm %s1043_s9, 128 }
 0x502   :  { %p827_p3 = scmp.ne.s32.totalorder %s1043_s9, %s826_s1  ;;  %p830_p4 = scmp.lt.u32.totalorder %s826_s1, %s1043_s9 }
 0x504   :  { %p832_p5 = pnand %p830_p4, %p827_p3 }
 0x506   :  { %835 = shalt.err (!%p832_p5)
}
 0x507   :  { %527 = dma.vmem_to_hbm [thread:$0]  %s525_s11, 128, %s1043_s9, [#allocation4]  }
 0x508   :  { %842 = dma.done.wait [#allocation4], 128  }
 0x509   :  { %843 = vsyncadd [#allocation4], 4294967168 }
 0x50a   :  { %531 = vsyncpa [#allocation3], 1 }
 0x50b   :  { %532 = vsyncpa [#allocation6], 1 }
 0x50c   :  { %533 = vsyncpa [#allocation9], 1 }
 0x50d   :  { %534 = vsyncpa [#allocation4], 1 }

</bundles_post_ra>
